<compile_context>
chip_gen: v6e
topology: v6e:2x2x1
jax: 0.10.0
libtpu: 0.0.40
codegen_flags: <defaults>
</compile_context>

<pallas_src>
import functools
import math

import jax
import jax.numpy as jnp
from jax.experimental import pallas as pl
from jax.experimental.pallas import tpu as pltpu

_SQRT2_INV = 1.0 / math.sqrt(2.0)


def _round_up(x: int, n: int) -> int:
    return ((x + n - 1) // n) * n


def _cdiv(a: int, b: int) -> int:
    return -(-a // b)


def _decompose(n: int):
    # Mirrors DES._decompose; HRViT channel widths are powers of two, assert it so a
    # width like 48 cannot silently produce a bogus (p, k) split in the harness.
    assert n % 2 == 0, f"feature dim must be even, got {n}"
    e = int(math.log2(n))
    assert (1 << e) == n, f"feature dim must be a power of two, got {n}"
    e1 = e // 2
    e2 = e - e1
    return 2 ** e1, 2 ** e2


def _des_kernel(x_ref, w1_ref, b1_ref, w2_ref, b2_ref, o_ref, *, approx_gelu: bool):
    # x_ref:  (TM, G*C_in)          packed token tile (G tokens per row)
    # w1_ref: (G*C_in, G*C_in)      kron(I_{G*k_in}, Wr^T)        (f32 or bf16)
    # b1_ref: (1, G*C_in)           tile(br, G*k_in)              (f32)
    # w2_ref: (G*C_in, G*C_out)     kron(I_G, kron(Wl^T, I_p))    (f32 or bf16)
    # b2_ref: (1, G*C_out)          tile(repeat(bl, p), G)        (f32)
    # o_ref:  (TM, G*C_out)
    x = x_ref[...].astype(w1_ref.dtype)           # bf16 single-pass MXU when weights are bf16
    h = jnp.dot(x, w1_ref[...], preferred_element_type=jnp.float32)
    h = h + b1_ref[...]

    if approx_gelu:
        # tanh approximation -> EUP slot (keeps VALU free); not bit-exact vs nn.GELU default
        h = jax.nn.gelu(h, approximate=True)
    else:
        # exact GELU, matches PyTorch nn.GELU(approximate='none')
        h = 0.5 * h * (1.0 + jax.lax.erf(h * _SQRT2_INV))

    out = jnp.dot(h.astype(w2_ref.dtype), w2_ref[...], preferred_element_type=jnp.float32)
    out = out + b2_ref[...]
    o_ref[...] = out.astype(o_ref.dtype)


def make_des_params(wr, br, wl, bl, *, g: int, weight_dtype=jnp.float32):
    """Precompute lane-packed Kronecker weights (do once; keep out of the hot path)."""
    p = wr.shape[0]
    k_out, k_in = wl.shape
    f32 = jnp.float32

    # proj_right applied per (k_in, p) block, replicated over the G packed tokens.
    w1 = jnp.kron(jnp.eye(g * k_in, dtype=f32), wr.astype(f32).T)          # (G*C_in, G*C_in)
    b1 = jnp.tile(br.astype(f32), g * k_in)[None, :]                        # (1, G*C_in)

    # proj_left contraction over k_in per p-slot (+ implicit transpose/flatten),
    # replicated over the G packed tokens.
    w2_tok = jnp.kron(wl.astype(f32).T, jnp.eye(p, dtype=f32))              # (C_in, C_out)
    w2 = jnp.kron(jnp.eye(g, dtype=f32), w2_tok)                            # (G*C_in, G*C_out)
    b2 = jnp.tile(jnp.repeat(bl.astype(f32), p), g)[None, :]                # (1, G*C_out)

    return (w1.astype(weight_dtype), b1, w2.astype(weight_dtype), b2)


def des_forward(x, wr, br, wl, bl, *, tm_max=4096, lane_target=128,
                exact=False, weight_dtype=None, params=None):
    """DES forward.  x: (..., in_features) -> (..., out_features).

    exact=True  -> f32 weights + exact erf GELU (bit-compatible with the PyTorch module).
    exact=False -> bf16 MXU passes (f32 accumulate) + tanh GELU (fast path, default).
    """
    p = wr.shape[0]
    k_out, k_in = wl.shape
    c_in = k_in * p
    c_out = k_out * p
    assert x.shape[-1] == c_in

    # Lane packing factor: smallest G making the lane dim a dense multiple of 128
    # (only when C_in divides 128; otherwise fall back to one token per row).
    g = lane_target // c_in if (c_in < lane_target and lane_target % c_in == 0) else 1
    lane_in = g * c_in
    lane_out = g * c_out

    if weight_dtype is None:
        weight_dtype = jnp.float32 if exact else jnp.bfloat16
    if params is None:
        params = make_des_params(wr, br, wl, bl, g=g, weight_dtype=weight_dtype)
    w1, b1, w2, b2 = params
    assert w1.shape == (lane_in, lane_in) and w2.shape == (lane_in, lane_out), (
        f"precomputed params built for a different packing: w1 {w1.shape}, w2 {w2.shape}, "
        f"expected {(lane_in, lane_in)} / {(lane_in, lane_out)}")

    batch_shape = x.shape[:-1]
    m = int(math.prod(batch_shape))
    xf = x.reshape(m, c_in)

    # Tiny pad only when the token count is not a multiple of the packing factor
    # (never triggers for HRViT shapes: H*W is a multiple of 4).
    m_pack = _round_up(m, g)
    if m_pack != m:
        xf = jnp.pad(xf, ((0, m_pack - m), (0, 0)))
    rows = m_pack // g
    xp = xf.reshape(rows, lane_in)

    # Balanced tiles: wasted work in the last block is <= 7 rows, not tm-1.
    n_steps = max(1, _cdiv(rows, tm_max))
    if n_steps == 1 and rows >= 16:
        n_steps = 2                      # let the "parallel" axis shard over v7x's 2 TCs
    tm = min(_round_up(_cdiv(rows, n_steps), 8), _round_up(rows, 8))
    grid = _cdiv(rows, tm)
    # No row padding / trailing slice: the final partial block uses Pallas edge masking.
    # This is safe because every output row depends only on its own input row
    # (OOB reads are undefined but only feed OOB rows, whose writes are dropped).

    itemsize = jnp.dtype(x.dtype).itemsize
    cost = pl.CostEstimate(
        flops=int(2 * rows * (lane_in * lane_in + lane_in * lane_out)),
        transcendentals=int(rows * lane_in),
        bytes_accessed=int(rows * (lane_in + lane_out) * itemsize
                           + (w1.size + w2.size) * jnp.dtype(w1.dtype).itemsize
                           + (b1.size + b2.size) * 4),
    )

    kernel = functools.partial(_des_kernel, approx_gelu=not exact)

    out = pl.pallas_call(
        kernel,
        out_shape=jax.ShapeDtypeStruct((rows, lane_out), x.dtype),
        grid=(grid,),
        in_specs=[
            pl.BlockSpec((tm, lane_in), lambda i: (i, 0)),
            pl.BlockSpec((lane_in, lane_in), lambda i: (0, 0)),
            pl.BlockSpec((1, lane_in), lambda i: (0, 0)),
            pl.BlockSpec((lane_in, lane_out), lambda i: (0, 0)),
            pl.BlockSpec((1, lane_out), lambda i: (0, 0)),
        ],
        out_specs=pl.BlockSpec((tm, lane_out), lambda i: (i, 0)),
        compiler_params=pltpu.CompilerParams(
            dimension_semantics=("parallel",),
        ),
        cost_estimate=cost,
    )(xp, w1, b1, w2, b2)

    out = out.reshape(m_pack, c_out)
    if m_pack != m:
        out = out[:m]
    return out.reshape(*batch_shape, c_out)


def des_reference(x, wr, br, wl, bl):
    """Pure-JAX transcription of the PyTorch DES.forward (for validation)."""
    p = wr.shape[0]
    k_out, k_in = wl.shape
    bshape = x.shape[:-1]
    xr = x.astype(jnp.float32).reshape(*bshape, k_in, p)
    a = xr @ wr.astype(jnp.float32).T + br.astype(jnp.float32)        # (..., k_in, p)
    a = jnp.swapaxes(a, -1, -2)                                       # (..., p, k_in)
    a = 0.5 * a * (1.0 + jax.lax.erf(a * _SQRT2_INV))                 # exact GELU
    z = a @ wl.astype(jnp.float32).T + bl.astype(jnp.float32)         # (..., p, k_out)
    z = jnp.swapaxes(z, -1, -2)                                       # (..., k_out, p)
    return z.reshape(*bshape, k_out * p).astype(x.dtype)


def _check(out, ref, tag, atol, rtol):
    if not jnp.allclose(out, ref, atol=atol, rtol=rtol):
        max_err = float(jnp.max(jnp.abs(out.astype(jnp.float32) - ref.astype(jnp.float32))))
        raise AssertionError(f"Pallas DES mismatch vs reference ({tag}), max abs err = {max_err}")


if __name__ == "__main__":
    # Module config (mirrors DES.__init__ for the first HRViTStage branch: C=32)
    in_features = 32
    out_features = 32
    _, p = _decompose(min(in_features, out_features))     # p = 8
    k_in = in_features // p                                # 4
    k_out = out_features // p                              # 4

    key = jax.random.PRNGKey(0)
    k1, k2, k3, k4, k5, k6, k7 = jax.random.split(key, 7)

    # PyTorch nn.Linear-style uniform init, deterministic.
    bound_r = 1.0 / math.sqrt(p)
    wr = jax.random.uniform(k1, (p, p), jnp.float32, -bound_r, bound_r)          # proj_right.weight
    br = jax.random.uniform(k2, (p,), jnp.float32, -bound_r, bound_r)            # proj_right.bias
    bound_l = 1.0 / math.sqrt(k_in)
    wl = jax.random.uniform(k3, (k_out, k_in), jnp.float32, -bound_l, bound_l)   # proj_left.weight
    bl = jax.random.uniform(k4, (k_out,), jnp.float32, -bound_l, bound_l)        # proj_left.bias

    g = 128 // in_features
    params_exact = make_des_params(wr, br, wl, bl, g=g, weight_dtype=jnp.float32)

    # (a) exact path (f32 + erf GELU), small shape consistent with the module: (B=2, N=16, C=32)
    x_small = jax.random.normal(k5, (2, 16, in_features), jnp.float32)
    out_small = jax.block_until_ready(
        des_forward(x_small, wr, br, wl, bl, exact=True, params=params_exact))
    ref_small = jax.block_until_ready(des_reference(x_small, wr, br, wl, bl))
    assert out_small.shape == (2, 16, out_features), out_small.shape
    _check(out_small, ref_small, "exact/small", atol=1e-5, rtol=1e-5)

    # (b) fast path (bf16 MXU + tanh GELU), token count not a multiple of the tile size
    #     -> exercises the balanced tiling + Pallas edge-block masking (no pad/slice copies).
    x_ragged = jax.random.normal(k6, (2, 50, in_features), jnp.float32)
    out_ragged = jax.block_until_ready(des_forward(x_ragged, wr, br, wl, bl))
    ref_ragged = jax.block_until_ready(des_reference(x_ragged, wr, br, wl, bl))
    assert out_ragged.shape == (2, 50, out_features), out_ragged.shape
    _check(out_ragged, ref_ragged, "fast/ragged", atol=5e-2, rtol=5e-2)

    # (c) fast path, token count not a multiple of the packing factor G
    #     -> exercises the (rare) small token-pad branch.
    x_unaligned = jax.random.normal(k7, (2, 51, in_features), jnp.float32)
    out_unaligned = jax.block_until_ready(des_forward(x_unaligned, wr, br, wl, bl))
    ref_unaligned = jax.block_until_ready(des_reference(x_unaligned, wr, br, wl, bl))
    assert out_unaligned.shape == (2, 51, out_features), out_unaligned.shape
    _check(out_unaligned, ref_unaligned, "fast/unaligned", atol=5e-2, rtol=5e-2)

    print("KERNEL_OK")
</pallas_src>

<mosaic_0001>
module attributes {stable_mosaic.version = 11 : i64} {
  func.func @_des_kernel(%arg0: i32, %arg1: memref<8x128xf32, #tpu.memory_space<vmem>>, %arg2: memref<128x128xf32, #tpu.memory_space<vmem>>, %arg3: memref<1x128xf32, #tpu.memory_space<vmem>>, %arg4: memref<128x128xf32, #tpu.memory_space<vmem>>, %arg5: memref<1x128xf32, #tpu.memory_space<vmem>>, %arg6: memref<8x128xf32, #tpu.memory_space<vmem>>) attributes {dimension_semantics = [#tpu.dimension_semantics<parallel>], iteration_bounds = array<i64: 1>, scalar_prefetch = 0 : i64, scratch_operands = 0 : i64, tpu.core_type = #tpu.core_type<tc>, window_params = [{transform_indices = @transform_0, window_bounds = array<i64: 8, 128>}, {pipeline_mode = #tpu.pipeline_mode<synchronous>, transform_indices = @transform_1, window_bounds = array<i64: 128, 128>}, {pipeline_mode = #tpu.pipeline_mode<synchronous>, transform_indices = @transform_2, window_bounds = array<i64: 1, 128>}, {pipeline_mode = #tpu.pipeline_mode<synchronous>, transform_indices = @transform_3, window_bounds = array<i64: 128, 128>}, {pipeline_mode = #tpu.pipeline_mode<synchronous>, transform_indices = @transform_4, window_bounds = array<i64: 1, 128>}, {transform_indices = @transform_5, window_bounds = array<i64: 8, 128>}]} {
    %c0 = arith.constant 0 : index
    %c0_0 = arith.constant 0 : index
    %0 = vector.load %arg1[%c0, %c0_0] : memref<8x128xf32, #tpu.memory_space<vmem>>, vector<8x128xf32>
    %c0_1 = arith.constant 0 : index
    %c0_2 = arith.constant 0 : index
    %1 = vector.load %arg2[%c0_1, %c0_2] : memref<128x128xf32, #tpu.memory_space<vmem>>, vector<128x128xf32>
    %cst = arith.constant dense<0.000000e+00> : vector<8x128xf32>
    %2 = tpu.matmul %0, %1, %cst {dimension_numbers = #tpu.dot_dimension_numbers<[1], [0], [0], [1], [0, 0, 1, 1], [], []>} : vector<8x128xf32>, vector<128x128xf32>, vector<8x128xf32> -> vector<8x128xf32>
    %c0_3 = arith.constant 0 : index
    %c0_4 = arith.constant 0 : index
    %3 = vector.load %arg3[%c0_3, %c0_4] : memref<1x128xf32, #tpu.memory_space<vmem>>, vector<1x128xf32>
    %4 = vector.broadcast %3 : vector<1x128xf32> to vector<8x128xf32>
    %5 = arith.addf %2, %4 : vector<8x128xf32>
    %cst_5 = arith.constant 5.000000e-01 : f32
    %6 = vector.broadcast %cst_5 : f32 to vector<8x128xf32>
    %7 = arith.mulf %6, %5 : vector<8x128xf32>
    %cst_6 = arith.constant 0.707106769 : f32
    %8 = vector.broadcast %cst_6 : f32 to vector<8x128xf32>
    %9 = arith.mulf %5, %8 : vector<8x128xf32>
    %10 = math.erf %9 : vector<8x128xf32>
    %cst_7 = arith.constant 1.000000e+00 : f32
    %11 = vector.broadcast %cst_7 : f32 to vector<8x128xf32>
    %12 = arith.addf %11, %10 : vector<8x128xf32>
    %13 = arith.mulf %7, %12 : vector<8x128xf32>
    %c0_8 = arith.constant 0 : index
    %c0_9 = arith.constant 0 : index
    %14 = vector.load %arg4[%c0_8, %c0_9] : memref<128x128xf32, #tpu.memory_space<vmem>>, vector<128x128xf32>
    %cst_10 = arith.constant dense<0.000000e+00> : vector<8x128xf32>
    %15 = tpu.matmul %13, %14, %cst_10 {dimension_numbers = #tpu.dot_dimension_numbers<[1], [0], [0], [1], [0, 0, 1, 1], [], []>} : vector<8x128xf32>, vector<128x128xf32>, vector<8x128xf32> -> vector<8x128xf32>
    %c0_11 = arith.constant 0 : index
    %c0_12 = arith.constant 0 : index
    %16 = vector.load %arg5[%c0_11, %c0_12] : memref<1x128xf32, #tpu.memory_space<vmem>>, vector<1x128xf32>
    %17 = vector.broadcast %16 : vector<1x128xf32> to vector<8x128xf32>
    %18 = arith.addf %15, %17 : vector<8x128xf32>
    %c0_13 = arith.constant 0 : index
    %c0_14 = arith.constant 0 : index
    %19 = vector.load %arg6[%c0_13, %c0_14] : memref<8x128xf32, #tpu.memory_space<vmem>>, vector<8x128xf32>
    tpu.vector_store %arg6[%c0_13, %c0_14], %18 {strides = array<i32>} : memref<8x128xf32, #tpu.memory_space<vmem>>, vector<8x128xf32>,
    return
  }
  func.func @transform_0(%arg0: i32) -> (i32, i32) {
    %c0_i32 = arith.constant 0 : i32
    %c0_i32_0 = arith.constant 0 : i32
    return %arg0, %c0_i32 : i32, i32
  }
  func.func @transform_1(%arg0: i32) -> (i32, i32) {
    %c0_i32 = arith.constant 0 : i32
    %c0_i32_0 = arith.constant 0 : i32
    %c0_i32_1 = arith.constant 0 : i32
    return %c0_i32, %c0_i32_0 : i32, i32
  }
  func.func @transform_2(%arg0: i32) -> (i32, i32) {
    %c0_i32 = arith.constant 0 : i32
    %c0_i32_0 = arith.constant 0 : i32
    %c0_i32_1 = arith.constant 0 : i32
    return %c0_i32, %c0_i32_0 : i32, i32
  }
  func.func @transform_3(%arg0: i32) -> (i32, i32) {
    %c0_i32 = arith.constant 0 : i32
    %c0_i32_0 = arith.constant 0 : i32
    %c0_i32_1 = arith.constant 0 : i32
    return %c0_i32, %c0_i32_0 : i32, i32
  }
  func.func @transform_4(%arg0: i32) -> (i32, i32) {
    %c0_i32 = arith.constant 0 : i32
    %c0_i32_0 = arith.constant 0 : i32
    %c0_i32_1 = arith.constant 0 : i32
    return %c0_i32, %c0_i32_0 : i32, i32
  }
  func.func @transform_5(%arg0: i32) -> (i32, i32) {
    %c0_i32 = arith.constant 0 : i32
    %c0_i32_0 = arith.constant 0 : i32
    return %arg0, %c0_i32 : i32, i32
  }
}

</mosaic_0001>

<bundles_post_ra>
// kernel: tpu_custom_call.1
= control target key start
LH: loop header
LB: loop body
LE: loop exit
PB: predicated region body
PF: predicated region fallthrough
CT: control target
= control target key end

     0   :  { %10 = vsyncpa [#allocation3], 0  ;;  %s561_s0 = inlined_call_operand.hbm [shape: f32[8,128], index: 0, kind: input, shape index: {}]   ;;  %s562_s1 = inlined_call_operand.hbm [shape: f32[128,128], index: 1, kind: input, shape index: {}]   ;;  %s563_s2 = inlined_call_operand.vmem [shape: f32[1,128], index: 2, kind: input, shape index: {}]   ;;  %s564_s3 = inlined_call_operand.hbm [shape: f32[128,128], index: 3, kind: input, shape index: {}]   ;;  %s565_s4 = inlined_call_operand.vmem [shape: f32[1,128], index: 4, kind: input, shape index: {}]   ;;  %s566_s5 = inlined_call_operand.hbm [shape: f32[8,128], index: 5, kind: output, shape index: {}]  }
   0x1   :  { %11 = vsyncpa [#allocation6], 0 }
   0x2   :  { %12 = vsyncpa [#allocation4], 0  ;;  %s471_s18 = smov [#allocation5]  }
   0x3   :  { %s28_s19 = sshll.u32 %s471_s18, 4  ;;  %s29_s19 = int_to_ptr.vmem [resolvable:$true] %s28_s19 }
   0x4   :  { %s393_s20 = scalar_lea.vmem %s29_s19, 2048  ;;  %p398_p1 = scmp.lt.s32.totalorder %s29_s19, %s29_s19 }
   0x5   :  { %p394_p0 = scmp.ne.s32.totalorder %s29_s19, %s393_s20  ;;  %p399_p2 = scmp.lt.s32.totalorder %s393_s20, %s393_s20 }
   0x7   :  { %p400_p3 = por %p399_p2, %p398_p1 }
   0x9   :  { %p401_p4 = pnand %p400_p3, %p394_p0 }
   0xb   :  { %404 = shalt.err (!%p401_p4)
}
   0xc   :  { %s472_s21 = smov 128   ;;  %s473_s22 = smov 8  }
   0xd   :  { %34 = dma.hbm_to_vmem [thread:$0]  %s562_s1, 2048, %s29_s19, [#allocation6], %s472_s21, %s472_s21, %s473_s22  }
   0xe   :  { %s474_s25 = smov [#allocation2]   ;;  %s475_s27 = smov [#allocation7]  }
   0xf   :  { %s19_s26 = sshll.u32 %s474_s25, 4  ;;  %s42_s28 = sshll.u32 %s475_s27, 4  ;;  %s20_s26 = int_to_ptr.vmem [resolvable:$true] %s19_s26  ;;  %s43_s28 = int_to_ptr.vmem [resolvable:$true] %s42_s28 }
  0x10   :  { %s413_s29 = scalar_lea.vmem %s20_s26, 128  ;;  %p418_p6 = scmp.lt.s32.totalorder %s20_s26, %s20_s26 }
  0x11   :  { %p414_p5 = scmp.ne.s32.totalorder %s20_s26, %s413_s29  ;;  %p419_p7 = scmp.lt.s32.totalorder %s413_s29, %s413_s29 }
  0x13   :  { %p420_p8 = por %p419_p7, %p418_p6 }
  0x15   :  { %p421_p9 = pnand %p420_p8, %p414_p5 }
  0x17   :  { %424 = shalt.err (!%p421_p9)
}
  0x18   :  { %22 = dma.hbm_to_vmem [thread:$0]  %s561_s0, 128, %s20_s26, [#allocation3]  }
  0x19   :  { %s433_s7 = scalar_lea.vmem %s43_s28, 2048  ;;  %p438_p11 = scmp.lt.s32.totalorder %s43_s28, %s43_s28 }
  0x1a   :  { %p434_p10 = scmp.ne.s32.totalorder %s43_s28, %s433_s7  ;;  %p439_p12 = scmp.lt.s32.totalorder %s433_s7, %s433_s7 }
  0x1c   :  { %p440_p13 = por %p439_p12, %p438_p11 }
  0x1e   :  { %p441_p0 = pnand %p440_p13, %p434_p10 }
  0x20   :  { %444 = shalt.err (!%p441_p0)
}
  0x21   :  { %48 = dma.hbm_to_vmem [thread:$0]  %s564_s3, 2048, %s43_s28, [#allocation6], %s472_s21, %s472_s21, %s473_s22  }
  0x22   :  { %465 = dma.done.wait [#allocation3], 128  }
  0x23   :  { %466 = vsyncadd [#allocation3], 4294967168 }
  0x24   :  { %467 = dma.done.wait [#allocation6], 4096  }
  0x25   :  { %468 = vsyncadd [#allocation6], 4294963200  ;;  %v476_v0 = vmov 0.0   ;;  %vm477_vm0 = vmmov 0   ;;  %v76_v1 = vld [vmem:[#allocation5 + $0x78] sm:$0xff]  ;;  %v75_v2 = vld [vmem:[#allocation5 + $0x70] sm:$0xff] }
  0x26   :  { %305 = vmatprep.subr.mxu0 %v476_v0  ;;  %337 = vmatprep.mubr.msk.f32.mxu0 %vm477_vm0, %v476_v0  ;;  %v74_v3 = vld [vmem:[#allocation5 + $0x68] sm:$0xff]  ;;  %v73_v4 = vld [vmem:[#allocation5 + $0x60] sm:$0xff]  ;;  %v174_v5 = vld [vmem:[#allocation7 + $0x78] sm:$0xff]  ;;  %s478_s11 = smov [#allocation8]  }
  0x27   :  { %340 = vmatprep.subr.mxu1 %v476_v0  ;;  %372 = vmatprep.mubr.msk.f32.mxu1 %vm477_vm0, %v476_v0  ;;  %v72_v6 = vld [vmem:[#allocation5 + $0x58] sm:$0xff]  ;;  %v173_v7 = vld [vmem:[#allocation7 + $0x70] sm:$0xff]  ;;  %v172_v8 = vld [vmem:[#allocation7 + $0x68] sm:$0xff]  ;;  %s259_s12 = sshll.u32 %s478_s11, 4  ;;  %s260_s12 = int_to_ptr.vmem [resolvable:$true] %s259_s12 }
  0x28   :  { %306 = vmatpush3.msra.mxu0 %v76_v1  ;;  %341 = vmatpush3.msra.mxu1 %v174_v5  ;;  %v71_v9 = vld [vmem:[#allocation5 + $0x50] sm:$0xff]  ;;  %v171_v10 = vld [vmem:[#allocation7 + $0x60] sm:$0xff]  ;;  %v70_v11 = vld [vmem:[#allocation5 + $0x48] sm:$0xff]  ;;  %p450_p2 = scmp.lt.s32.totalorder %s260_s12, %s260_s12 }
  0x29   :  { %307 = vmatprep.subr.mxu0 %v476_v0  ;;  %342 = vmatprep.subr.mxu1 %v476_v0  ;;  %v69_v12 = vld [vmem:[#allocation5 + $0x40] sm:$0xff]  ;;  %v68_v13 = vld [vmem:[#allocation5 + $0x38] sm:$0xff]  ;;  %v67_v14 = vld [vmem:[#allocation5 + $0x30] sm:$0xff] }
  0x2a   :  { %308 = vmatpush3.msra.mxu0 %v75_v2  ;;  %343 = vmatpush3.msra.mxu1 %v173_v7  ;;  %v66_v15 = vld [vmem:[#allocation5 + $0x28] sm:$0xff]  ;;  %v65_v16 = vld [vmem:[#allocation5 + $0x20] sm:$0xff]  ;;  %v64_v17 = vld [vmem:[#allocation5 + $0x18] sm:$0xff] }
  0x2b   :  { %309 = vmatprep.subr.mxu0 %v476_v0  ;;  %344 = vmatprep.subr.mxu1 %v476_v0  ;;  %v63_v18 = vld [vmem:[#allocation5 + $0x10] sm:$0xff]  ;;  %v62_v19 = vld [vmem:[#allocation5 + $0x8] sm:$0xff]  ;;  %v61_v20 = vld [vmem:[#allocation5] sm:$0xff] }
  0x2c   :  { %310 = vmatpush3.msra.mxu0 %v74_v3  ;;  %345 = vmatpush3.msra.mxu1 %v172_v8  ;;  %v60_v21 = vld [vmem:[#allocation2] sm:$0xff]  ;;  %v169_v23 = vld [vmem:[#allocation7 + $0x50] sm:$0xff]  ;;  %v168_v24 = vld [vmem:[#allocation7 + $0x48] sm:$0xff] }
  0x2d   :  { %311 = vmatprep.subr.mxu0 %v476_v0  ;;  %346 = vmatprep.subr.mxu1 %v476_v0  ;;  %v170_v22 = vld [vmem:[#allocation7 + $0x58] sm:$0xff]  ;;  %v167_v25 = vld [vmem:[#allocation7 + $0x40] sm:$0xff]  ;;  %v165_v27 = vld [vmem:[#allocation7 + $0x30] sm:$0xff] }
  0x2e   :  { %312 = vmatpush3.msra.mxu0 %v73_v4  ;;  %347 = vmatpush3.msra.mxu1 %v171_v10  ;;  %v166_v26 = vld [vmem:[#allocation7 + $0x38] sm:$0xff]  ;;  %v164_v28 = vld [vmem:[#allocation7 + $0x28] sm:$0xff]  ;;  %v163_v29 = vld [vmem:[#allocation7 + $0x20] sm:$0xff] }
  0x2f   :  { %313 = vmatprep.subr.mxu0 %v476_v0  ;;  %348 = vmatprep.subr.mxu1 %v476_v0  ;;  %v162_v30 = vld [vmem:[#allocation7 + $0x18] sm:$0xff]  ;;  %v161_v31 = vld [vmem:[#allocation7 + $0x10] sm:$0xff]  ;;  %v160_v32 = vld [vmem:[#allocation7 + $0x8] sm:$0xff] }
  0x30   :  { %314 = vmatpush3.msra.mxu0 %v72_v6  ;;  %349 = vmatpush3.msra.mxu1 %v170_v22  ;;  %v159_v33 = vld [vmem:[#allocation7] sm:$0xff]  ;;  %v269_v34 = vld [vmem:[%s563_s2] ss:$0 sm:$0xff]  ;;  %s445_s2 = scalar_lea.vmem %s260_s12, 128 }
  0x31   :  { %315 = vmatprep.subr.mxu0 %v476_v0  ;;  %350 = vmatprep.subr.mxu1 %v476_v0  ;;  %v270_v43 = vld [vmem:[%s565_s4] ss:$0 sm:$0xff]  ;;  %p446_p1 = scmp.ne.s32.totalorder %s260_s12, %s445_s2  ;;  %p451_p3 = scmp.lt.s32.totalorder %s445_s2, %s445_s2 }
  0x32   :  { %316 = vmatpush3.msra.mxu0 %v71_v9  ;;  %351 = vmatpush3.msra.mxu1 %v169_v23 }
  0x33   :  { %317 = vmatprep.subr.mxu0 %v476_v0  ;;  %352 = vmatprep.subr.mxu1 %v476_v0  ;;  %p452_p4 = por %p451_p3, %p450_p2 }
  0x34   :  { %318 = vmatpush3.msra.mxu0 %v70_v11  ;;  %353 = vmatpush3.msra.mxu1 %v168_v24 }
  0x35   :  { %319 = vmatprep.subr.mxu0 %v476_v0  ;;  %354 = vmatprep.subr.mxu1 %v476_v0  ;;  %p453_p5 = pnand %p452_p4, %p446_p1 }
  0x36   :  { %320 = vmatpush3.msra.mxu0 %v69_v12  ;;  %355 = vmatpush3.msra.mxu1 %v167_v25 }
  0x37   :  { %321 = vmatprep.subr.mxu0 %v476_v0  ;;  %356 = vmatprep.subr.mxu1 %v476_v0 }
  0x38   :  { %322 = vmatpush3.msra.mxu0 %v68_v13  ;;  %357 = vmatpush3.msra.mxu1 %v166_v26 }
  0x39   :  { %323 = vmatprep.subr.mxu0 %v476_v0  ;;  %358 = vmatprep.subr.mxu1 %v476_v0 }
  0x3a   :  { %324 = vmatpush3.msra.mxu0 %v67_v14  ;;  %359 = vmatpush3.msra.mxu1 %v165_v27 }
  0x3b   :  { %325 = vmatprep.subr.mxu0 %v476_v0  ;;  %360 = vmatprep.subr.mxu1 %v476_v0 }
  0x3c   :  { %326 = vmatpush3.msra.mxu0 %v66_v15  ;;  %361 = vmatpush3.msra.mxu1 %v164_v28 }
  0x3d   :  { %327 = vmatprep.subr.mxu0 %v476_v0  ;;  %362 = vmatprep.subr.mxu1 %v476_v0 }
  0x3e   :  { %328 = vmatpush3.msra.mxu0 %v65_v16  ;;  %363 = vmatpush3.msra.mxu1 %v163_v29 }
  0x3f   :  { %329 = vmatprep.subr.mxu0 %v476_v0  ;;  %364 = vmatprep.subr.mxu1 %v476_v0 }
  0x40   :  { %330 = vmatpush3.msra.mxu0 %v64_v17  ;;  %365 = vmatpush3.msra.mxu1 %v162_v30 }
  0x41   :  { %331 = vmatprep.subr.mxu0 %v476_v0  ;;  %366 = vmatprep.subr.mxu1 %v476_v0 }
  0x42   :  { %332 = vmatpush3.msra.mxu0 %v63_v18  ;;  %367 = vmatpush3.msra.mxu1 %v161_v31 }
  0x43   :  { %333 = vmatprep.subr.mxu0 %v476_v0  ;;  %368 = vmatprep.subr.mxu1 %v476_v0 }
  0x44   :  { %334 = vmatpush3.msra.mxu0 %v62_v19  ;;  %369 = vmatpush3.msra.mxu1 %v160_v32 }
  0x45   :  { %335 = vmatprep.subr.mxu0 %v476_v0  ;;  %370 = vmatprep.subr.mxu1 %v476_v0 }
  0x46   :  { %336 = vmatpush3.msra.mxu0 %v61_v20  ;;  %371 = vmatpush3.msra.mxu1 %v159_v33 }
  0x47   :  { %338 = vmatmul.mubr.f32.vlgmr.msra.gmra.mxu0 %v60_v21 }
 0x107   :  { %v150_v35 = vpop.f32.mrf.mxu0 }
 0x108   :  { %v151_v36 = vadd.f32 %v269_v34, %v150_v35 }
 0x109   :  { %v339_v37 = vpop.f32.mrf.mxu0 }
 0x10a   :  { %v155_v38 = vmul.f32 0.70710677, %v151_v36  ;;  %v154_v40 = vmul.f32 0.5, %v151_v36 }
 0x10c   :  { %383 = verf.f32 %v155_v38 }
 0x119   :  { %v384_v39 = vpop.eup %383 }
 0x11a   :  { %v157_v41 = vadd.f32 1.0, %v384_v39 }
 0x11c   :  { %v158_v42 = vmul.f32 %v157_v41, %v154_v40 }
 0x11e   :  { %373 = vmatmul.mubr.f32.vlgmr.msra.gmra.mxu1 %v158_v42 }
 0x1de   :  { %v248_v44 = vpop.f32.mrf.mxu1 }
 0x1df   :  { %v249_v45 = vadd.f32 %v270_v43, %v248_v44 }
 0x1e0   :  { %v374_v46 = vpop.f32.mrf.mxu1 }
 0x1e1   :  { %252 = vst [vmem:[#allocation8] sm:$0xff] %v249_v45 }
 0x1e2   :  { %456 = shalt.err (!%p453_p5)
}
 0x1e3   :  { %262 = dma.vmem_to_hbm [thread:$0]  %s260_s12, 128, %s566_s5, [#allocation4]  }
 0x1e4   :  { %469 = dma.done.wait [#allocation4], 128  }
 0x1e5   :  { %470 = vsyncadd [#allocation4], 4294967168 }
 0x1e6   :  { %266 = vsyncpa [#allocation3], 1 }
 0x1e7   :  { %267 = vsyncpa [#allocation6], 1 }
 0x1e8   :  { %268 = vsyncpa [#allocation4], 1 }

</bundles_post_ra>
